<compile_context>
chip_gen: v5e
topology: v5e:2x2
jax: 0.10.0
libtpu: 0.0.40
codegen_flags: <defaults>
</compile_context>

<pallas_src>
import functools

import jax
import jax.numpy as jnp
from jax.experimental import pallas as pl
from jax.experimental.pallas import tpu as pltpu


def _maxpool_rows_kernel(x_ref, o_ref, *, k, w):
    # x_ref block: (rblk, k*w)  -- one pooling window-row per sublane row.
    # o_ref block: (rblk, w // k)
    x = x_ref[...]

    # kh reduction first: the k image rows of each window-row sit in
    # contiguous lane ranges [j*w, (j+1)*w) -> static slices + VPU max.
    y = x[:, 0:w]
    for j in range(1, k):
        y = jnp.maximum(y, x[:, j * w:(j + 1) * w])

    # kw reduction on the already k-fold reduced data.
    wo = w // k
    z = jnp.max(y.reshape(y.shape[0], wo, k), axis=-1)
    o_ref[...] = z.astype(o_ref.dtype)


def maxpool2d(x, kernel_size=2, stride=2, padding=0,
              *, target_block_bytes=2 * 1024 * 1024):
    """MaxPool2d forward matching torch.nn.MaxPool2d(kernel, stride, padding)."""
    assert padding == 0 and stride == kernel_size, (
        "only non-overlapping, unpadded pooling implemented")
    # TODO(synk): general stride/padding (overlapping windows, -inf padding).
    N, C, H, W = x.shape
    k = kernel_size
    assert H % k == 0 and W % k == 0, "spatial dims must divide kernel_size"
    Ho, Wo = H // k, W // k

    # Free reshape: one view-row per output row, fully contiguous in HBM.
    R = N * C * Ho
    x2 = x.reshape(R, k * W)

    # Row-block size: ~target_block_bytes per input DMA tile, rounded to the
    # dtype's sublane tile; keep >=2 grid steps when possible (v7x dual-TC).
    # Footprint: 2 bufs * (in + out) ~= 2.5 * tile  -> well inside scoped VMEM.
    itemsize = jnp.dtype(x.dtype).itemsize
    sub = 8 * max(1, 4 // itemsize)          # 8 (f32), 16 (bf16), 32 (int8)
    bytes_per_row = k * W * itemsize
    rblk = max(1, target_block_bytes // bytes_per_row)
    if R >= 2 * sub:
        rblk = min(rblk, (R // 2) // sub * sub)   # at least 2 grid steps
        rblk = max(sub, (rblk // sub) * sub)      # multiple of sublane tile
        rblk = min(rblk, R)
    else:
        rblk = R                                   # tiny: single full-extent block
    grid = (pl.cdiv(R, rblk),)

    kern = functools.partial(_maxpool_rows_kernel, k=k, w=W)
    out2 = pl.pallas_call(
        kern,
        out_shape=jax.ShapeDtypeStruct((R, Wo), x.dtype),
        grid_spec=pltpu.PrefetchScalarGridSpec(
            num_scalar_prefetch=0,
            grid=grid,
            in_specs=[pl.BlockSpec((rblk, k * W), lambda i: (i, 0))],
            out_specs=pl.BlockSpec((rblk, Wo), lambda i: (i, 0)),
        ),
        compiler_params=pltpu.CompilerParams(
            dimension_semantics=("parallel",),
            vmem_limit_bytes=32 * 1024 * 1024,
        ),
    )(x2)

    # Free reshape back to NCHW output layout.
    return out2.reshape(N, C, Ho, Wo)


if __name__ == "__main__":
    key = jax.random.PRNGKey(0)
    # Small NCHW input consistent with the module's forward.
    x = jax.random.normal(key, (2, 4, 16, 16), dtype=jnp.float32)

    # NOTE: for inputs this tiny a pure-JAX reduce-window would beat the
    # pallas_call fixed overhead; we run the Pallas kernel here to exercise it.
    out = maxpool2d(x, kernel_size=2, stride=2, padding=0)
    out = jax.block_until_ready(out)

    # Pure-JAX reference (same semantics as torch MaxPool2d(2, 2, 0)).
    N, C, H, W = x.shape
    ref = jnp.max(x.reshape(N, C, H // 2, 2, W // 2, 2), axis=(3, 5))

    assert out.shape == (2, 4, 8, 8), out.shape
    assert out.dtype == x.dtype
    assert jnp.allclose(out, ref), "mismatch vs reference"
    print("KERNEL_OK")
</pallas_src>

<mosaic_0001>
module attributes {stable_mosaic.version = 11 : i64} {
  func.func @_maxpool_rows_kernel(%arg0: i32, %arg1: memref<32x32xf32, #tpu.memory_space<vmem>>, %arg2: memref<32x8xf32, #tpu.memory_space<vmem>>) attributes {dimension_semantics = [#tpu.dimension_semantics<parallel>], iteration_bounds = array<i64: 2>, scalar_prefetch = 0 : i64, scratch_operands = 0 : i64, tpu.core_type = #tpu.core_type<tc>, window_params = [{transform_indices = @transform_0, window_bounds = array<i64: 32, 32>}, {transform_indices = @transform_1, window_bounds = array<i64: 32, 8>}]} {
    %c0 = arith.constant 0 : index
    %c0_0 = arith.constant 0 : index
    %0 = vector.load %arg1[%c0, %c0_0] : memref<32x32xf32, #tpu.memory_space<vmem>>, vector<32x32xf32>
    %1 = vector.extract_strided_slice %0 {offsets = [0, 0], sizes = [32, 16], strides = [1, 1]} : vector<32x32xf32> to vector<32x16xf32>
    %2 = vector.extract_strided_slice %0 {offsets = [0, 16], sizes = [32, 16], strides = [1, 1]} : vector<32x32xf32> to vector<32x16xf32>
    %3 = arith.maximumf %1, %2 : vector<32x16xf32>
    %4 = vector.shape_cast %3 : vector<32x16xf32> to vector<32x8x2xf32>
    %cst = arith.constant dense<0xFF800000> : vector<32x8xf32>
    %5 = vector.multi_reduction <maximumf>, %4, %cst [2] : vector<32x8x2xf32> to vector<32x8xf32>
    %c0_1 = arith.constant 0 : index
    %c0_2 = arith.constant 0 : index
    %6 = vector.load %arg2[%c0_1, %c0_2] : memref<32x8xf32, #tpu.memory_space<vmem>>, vector<32x8xf32>
    tpu.vector_store %arg2[%c0_1, %c0_2], %5 {strides = array<i32>} : memref<32x8xf32, #tpu.memory_space<vmem>>, vector<32x8xf32>,
    return
  }
  func.func @transform_0(%arg0: i32) -> (i32, i32) {
    %c0_i32 = arith.constant 0 : i32
    %c0_i32_0 = arith.constant 0 : i32
    return %arg0, %c0_i32 : i32, i32
  }
  func.func @transform_1(%arg0: i32) -> (i32, i32) {
    %c0_i32 = arith.constant 0 : i32
    %c0_i32_0 = arith.constant 0 : i32
    return %arg0, %c0_i32 : i32, i32
  }
}

</mosaic_0001>

<bundles_post_ra>
// kernel: tpu_custom_call.1
= control target key start
LH: loop header
LB: loop body
LE: loop exit
PB: predicated region body
PF: predicated region fallthrough
CT: control target
= control target key end

     0   :  { %s1001_s6 = smov 0   ;;  %s1562_s0 = inlined_call_operand.vmem [shape: f32[64,32], index: 0, kind: input, shape index: {}]   ;;  %s1563_s1 = inlined_call_operand.vmem [shape: f32[64,8], index: 1, kind: output, shape index: {}]  }
   0x1 LB: > { %s944_s7 = sadd.s32 4294967295, %s979_s6   ;;  %p948_p0 = scmp.ge.s32.totalorder %s979_s6, 1  ;;  %s979_s6 = sphi %s1001_s6, %s11_s6  }
   0x2   : > { %p88_p1 = scmp.lt.s32.totalorder %s979_s6, 3 }
   0x4   : > { %p89_p2 = pnand %p948_p0, %p88_p1 }
   0x5   : > { %s949_s8 = sshll.u32 (!%p89_p2), %s944_s7, 2  ;;  %s981_s13 = smov (!%p89_p2), 112  }
   0x6   : > { %92 = sbr.rel (%p89_p2) target bundleno = 527 (0x20f), region = 24  ;;  %p109_p3 = scmp.lt.s32.totalorder (!%p89_p2), %s949_s8, 7 }
   0x7   : > { %s982_s14 = smov (!%p89_p2), 126   ;;  %s983_s15 = smov (!%p89_p2), 124  }
   0x8   : > { %s984_s16 = smov (!%p89_p2), 122   ;;  %s985_s17 = smov (!%p89_p2), 120  }
   0x9   : > { %s986_s18 = smov (!%p89_p2), 118   ;;  %s987_s19 = smov (!%p89_p2), 116  }
   0xa   : > { %s988_s20 = smov (!%p89_p2), 114  }
   0xb   : > { %s1565_s8 = smov (!%p109_p3, %s949_s8), 7  ;;  %vm233_vm0 = vcmask 1047556   ;;  %v989_v20 = vmov 1983009808   ;;  %vm681_vm1 = vcmask 15360   ;;  %vm844_vm2 = vcmask 1041409  }
   0xc   : > { %s950_s9 = sshll.u32 %s1565_s8, 3  ;;  %v238_v21 = vunpack.c.l.s4 %v989_v20  ;;  %vm846_vm3 = vcmask 1042434   ;;  %vm848_vm4 = vcmask 1043459   ;;  %vm850_vm5 = vcmask 1044484  }
   0xd   : > { %s112_s12 = scalar_lea.vmem %s1562_s0, %s950_s9  ;;  %vm852_vm6 = vcmask 1045509   ;;  %vm854_vm7 = vcmask 1046534   ;;  %vm856_vm8 = vcmask 1047559   ;;  %s1500_s23 = scalar_lea.vmem %s1563_s1, %s950_s9  ;;  %vm883_vm9 = vcmask 64512  }
   0xe   : > { %v122_v0 = vld [vmem:[%s112_s12 + $0x10] sm:$0xff]  ;;  %v120_v1 = vld [vmem:[%s112_s12] sm:$0xff]  ;;  %v123_v2 = vld [vmem:[%s112_s12 + $0x18] sm:$0xff]  ;;  %v1063_v26 = vunpack.c.0.s8 %v238_v21 }
   0xf   : > { %132 = vrot.lane.b32.xlu1 %v122_v0, %s981_s13  ;;  %128 = vrot.lane.b32.xlu0 %v120_v1, %s981_s13  ;;  %v121_v3 = vld [vmem:[%s112_s12 + $0x8] sm:$0xff] }
  0x17   : > { %134 = vrot.lane.b32.xlu1 %v123_v2, %s981_s13  ;;  %130 = vrot.lane.b32.xlu0 %v121_v3, %s981_s13 }
  0x81   : > { %v133_v4 = vpop.permute.xlu1 %132  ;;  %v129_v5 = vpop.permute.xlu0 %128 }
  0x82   : > { %v1017_v6 = vmax.f32 %v122_v0, %v133_v4  ;;  %v1019_v7 = vmax.f32 %v120_v1, %v129_v5 }
  0x84   : > { %152 = vrot.lane.b32.xlu0 %v1017_v6, %s982_s14  ;;  %148 = vrot.lane.b32.xlu2 %v1019_v7, %s982_s14  ;;  %v459_v28 = vrot.slane %v1017_v6, 4 }
  0x89   : > { %v135_v8 = vpop.permute.xlu1 %134  ;;  %v131_v9 = vpop.permute.xlu0 %130 }
  0x8a   : > { %v1023_v10 = vmax.f32 %v123_v2, %v135_v8  ;;  %v1025_v11 = vmax.f32 %v121_v3, %v131_v9 }
  0x8c   : > { %154 = vrot.lane.b32.xlu1 %v1023_v10, %s982_s14  ;;  %162 = vrot.lane.b32.xlu0 %v1025_v11, %s983_s15  ;;  %v571_v51 = vrot.slane %v1023_v10, 4  ;;  %v347_v21 = vrot.slane %v1025_v11, 4 }
  0x8d   : > { %150 = vrot.lane.b32.xlu2 %v1025_v11, %s982_s14 }
  0x94   : > { %164 = vrot.lane.b32.xlu1 %v1017_v6, %s983_s15  ;;  %172 = vrot.lane.b32.xlu0 %v1019_v7, %s984_s16 }
  0x95   : > { %160 = vrot.lane.b32.xlu2 %v1019_v7, %s983_s15 }
  0x9c   : > { %174 = vrot.lane.b32.xlu1 %v1025_v11, %s984_s16  ;;  %178 = vrot.lane.b32.xlu0 %v1023_v10, %s984_s16 }
  0x9d   : > { %166 = vrot.lane.b32.xlu2 %v1023_v10, %s983_s15 }
  0xa4   : > { %184 = vrot.lane.b32.xlu1 %v1019_v7, %s985_s17  ;;  %188 = vrot.lane.b32.xlu0 %v1017_v6, %s985_s17 }
  0xa5   : > { %176 = vrot.lane.b32.xlu2 %v1017_v6, %s984_s16 }
  0xac   : > { %190 = vrot.lane.b32.xlu1 %v1023_v10, %s985_s17  ;;  %198 = vrot.lane.b32.xlu0 %v1025_v11, %s986_s18 }
  0xad   : > { %186 = vrot.lane.b32.xlu2 %v1025_v11, %s985_s17 }
  0xb4   : > { %200 = vrot.lane.b32.xlu1 %v1017_v6, %s986_s18  ;;  %208 = vrot.lane.b32.xlu0 %v1019_v7, %s987_s19 }
  0xb5   : > { %196 = vrot.lane.b32.xlu2 %v1019_v7, %s986_s18 }
  0xbc   : > { %210 = vrot.lane.b32.xlu1 %v1025_v11, %s987_s19  ;;  %214 = vrot.lane.b32.xlu0 %v1023_v10, %s987_s19 }
  0xbd   : > { %202 = vrot.lane.b32.xlu2 %v1023_v10, %s986_s18 }
  0xc4   : > { %220 = vrot.lane.b32.xlu1 %v1019_v7, %s988_s20  ;;  %224 = vrot.lane.b32.xlu0 %v1017_v6, %s988_s20 }
  0xc5   : > { %212 = vrot.lane.b32.xlu2 %v1017_v6, %s987_s19 }
  0xcc   : > { %226 = vrot.lane.b32.xlu1 %v1023_v10, %s988_s20 }
  0xcd   : > { %222 = vrot.lane.b32.xlu2 %v1025_v11, %s988_s20 }
  0xde   : > { %v1053_v12 = vpop.permute.xlu2 %148 }
  0xdf   : > { %v247_v4 = vrot.slane %v1053_v12, 4 }
  0xe7   : > { %v1055_v13 = vpop.permute.xlu2 %150 }
  0xef   : > { %v1057_v14 = vpop.permute.xlu2 %160 }
  0xf0   : > { %v232_v8 = vrot.slane %v1057_v14, 4 }
  0xf6   : > { %v153_v15 = vpop.permute.xlu0 %152 }
  0xf7   : > { %v167_v16 = vpop.permute.xlu2 %166  ;;  %v471_v17 = vrot.slane %v153_v15, 4 }
  0xf8   : > { %v569_v36 = vrot.slane %v167_v16, 4  ;;  %v572_v56 = vsel %vm233_vm0, %v167_v16, %v571_v51 }
  0xf9   : > { %v580_v60 = vperm.slane %v572_v56, %v1063_v26 }
  0xfa   : > { %v570_v44 = vsel %vm233_vm0, %v569_v36, %v1023_v10  ;;  %v235_v10 = vrot.slane %v1019_v7, 4 }
  0xfb   : > { %v576_v55 = vperm.slane %v570_v44, %v1063_v26  ;;  %v631_v5 = vrot.slane %v580_v60, 4 }
  0xfc   : > { %v236_v20 = vsel %vm233_vm0, %v1057_v14, %v235_v10 }
  0xfd   : > { %v619_v61 = vrot.slane %v576_v55, 4 }
  0xfe   : > { %v155_v18 = vpop.permute.xlu1 %154  ;;  %v1059_v19 = vpop.permute.xlu0 %162 }
  0xff   : > { %v177_v22 = vpop.permute.xlu2 %176  ;;  %v583_v45 = vrot.slane %v155_v18, 4  ;;  %v345_v36 = vrot.slane %v1059_v19, 4 }
 0x100   : > { %v469_v23 = vrot.slane %v177_v22, 4  ;;  %v472_v24 = vsel %vm233_vm0, %v177_v22, %v471_v17 }
 0x101   : > { %v480_v27 = vperm.slane %v472_v24, %v1063_v26 }
 0x102   : > { %v470_v25 = vsel %vm233_vm0, %v469_v23, %v153_v15  ;;  %v234_v23 = vsel %vm233_vm0, %v232_v8, %v1019_v7 }
 0x103   : > { %v476_v31 = vperm.slane %v470_v25, %v1063_v26  ;;  %v517_v37 = vrot.slane %v480_v27, 4  ;;  %v359_v25 = vrot.slane %v1055_v13, 4 }
 0x105   : > { %v505_v41 = vrot.slane %v476_v31, 4 }
 0x106   : > { %v165_v29 = vpop.permute.xlu1 %164  ;;  %v173_v30 = vpop.permute.xlu0 %172 }
 0x107   : > { %v457_v32 = vrot.slane %v165_v29, 4  ;;  %v460_v33 = vsel %vm233_vm0, %v165_v29, %v459_v28  ;;  %v1069_v34 = vpop.permute.xlu2 %186  ;;  %v248_v15 = vsel %vm233_vm0, %v173_v30, %v247_v4 }
 0x108   : > { %v468_v35 = vperm.slane %v460_v33, %v1063_v26  ;;  %v256_v24 = vperm.slane %v248_v15, %v1063_v26  ;;  %v371_v10 = vrot.slane %v1069_v34, 4 }
 0x109   : > { %v458_v38 = vsel %vm233_vm0, %v457_v32, %v1017_v6  ;;  %v245_v6 = vrot.slane %v173_v30, 4  ;;  %v244_v30 = vperm.slane %v236_v20, %v1063_v26  ;;  %v990_v32 = vmov 1934713408  }
 0x10a   : > { %v464_v39 = vperm.slane %v458_v38, %v1063_v26  ;;  %v519_v40 = vrot.slane %v468_v35, 4  ;;  %v1076_v42 = vsel %vm233_vm0, %v517_v37, %v468_v35  ;;  %v286_v33 = vunpack.c.l.s4 %v990_v32 }
 0x10b   : > { %v246_v22 = vsel %vm233_vm0, %v245_v6, %v1053_v12  ;;  %v240_v35 = vperm.slane %v234_v23, %v1063_v26 }
 0x10c   : > { %v507_v43 = vrot.slane %v464_v39, 4  ;;  %v1081_v46 = vsel %vm233_vm0, %v505_v41, %v464_v39  ;;  %v1084_v47 = vsel %vm233_vm0, %v480_v27, %v519_v40  ;;  %v348_v27 = vsel %vm233_vm0, %v1059_v19, %v347_v21 }
 0x10d   : > { %v252_v12 = vperm.slane %v246_v22, %v1063_v26  ;;  %v356_v39 = vperm.slane %v348_v27, %v1063_v26  ;;  %v293_v40 = vrot.slane %v256_v24, 4  ;;  %v1155_v19 = vunpack.c.0.s8 %v286_v33 }
 0x10e   : > { %v175_v48 = vpop.permute.xlu1 %174  ;;  %v179_v49 = vpop.permute.xlu0 %178  ;;  %v1087_v50 = vsel %vm233_vm0, %v476_v31, %v507_v43 }
 0x10f   : > { %v1090_v52 = vpop.permute.xlu2 %196  ;;  %v581_v53 = vrot.slane %v179_v49, 4  ;;  %v584_v54 = vsel %vm233_vm0, %v179_v49, %v583_v45  ;;  %v360_v37 = vsel %vm233_vm0, %v175_v48, %v359_v25  ;;  %v281_v43 = vrot.slane %v252_v12, 4 }
 0x110   : > { %v592_v59 = vperm.slane %v584_v54, %v1063_v26  ;;  %v368_v44 = vperm.slane %v360_v37, %v1063_v26  ;;  %v283_v45 = vrot.slane %v240_v35, 4  ;;  %v346_v49 = vsel %vm233_vm0, %v345_v36, %v1025_v11 }
 0x111   : > { %v582_v57 = vsel %vm233_vm0, %v581_v53, %v155_v18  ;;  %v357_v18 = vrot.slane %v175_v48, 4  ;;  %v407_v48 = vrot.slane %v356_v39, 4  ;;  %v294_v53 = vsel %vm233_vm0, %v293_v40, %v244_v30 }
 0x112   : > { %v588_v58 = vperm.slane %v582_v57, %v1063_v26  ;;  %v629_v63 = vrot.slane %v592_v59, 4  ;;  %v1116_v16 = vsel %vm233_vm0, %v592_v59, %v631_v5  ;;  %v284_v57 = vsel %vm233_vm0, %v252_v12, %v283_v45 }
 0x113   : > { %v358_v7 = vsel %vm233_vm0, %v357_v18, %v1055_v13  ;;  %v295_v13 = vrot.slane %v244_v30, 4  ;;  %v408_v59 = vsel %vm233_vm0, %v368_v44, %v407_v48  ;;  %v271_v15 = vrot.slane %v1090_v52, 4 }
 0x114   : > { %v617_v62 = vrot.slane %v588_v58, 4  ;;  %v1104_v2 = vsel %vm233_vm0, %v588_v58, %v619_v61  ;;  %v1119_v17 = vsel %vm233_vm0, %v629_v63, %v580_v60  ;;  %v364_v41 = vperm.slane %v358_v7, %v1063_v26 }
 0x115   : > { %v296_v51 = vsel %vm233_vm0, %v256_v24, %v295_v13  ;;  %v352_v58 = vperm.slane %v346_v49, %v1063_v26  ;;  %v282_v60 = vsel %vm233_vm0, %v281_v43, %v240_v35  ;;  %v1169_v61 = vperm.slane %v294_v53, %v1155_v19 }
 0x116   : > { %v1099_v0 = vpop.permute.xlu1 %184  ;;  %v1101_v1 = vpop.permute.xlu0 %188  ;;  %v1111_v9 = vsel %vm233_vm0, %v617_v62, %v576_v55  ;;  %v393_v54 = vrot.slane %v364_v41, 4  ;;  %v1166_v11 = vperm.slane %v296_v51, %v1155_v19  ;;  %v1172_v62 = vperm.slane %v284_v57, %v1155_v19 }
 0x117   : > { %v1106_v3 = vpop.permute.xlu2 %202  ;;  %v483_v28 = vrot.slane %v1101_v1, 4  ;;  %v405_v63 = vrot.slane %v368_v44, 4  ;;  %v1175_v4 = vperm.slane %v408_v59, %v1155_v19  ;;  %v1178_v5 = vperm.slane %v282_v60, %v1155_v19 }
 0x118   : > { %v394_v6 = vsel %vm233_vm0, %v393_v54, %v352_v58  ;;  %v395_v8 = vrot.slane %v352_v58, 4  ;;  %v343_v20 = vrot.slane %v1166_v11, 4  ;;  %v339_v21 = vrot.slane %v1169_v61, 4 }
 0x119   : > { %v335_v23 = vrot.slane %v1172_v62, 4  ;;  %v1188_v24 = vperm.slane %v394_v6, %v1155_v19  ;;  %v455_v30 = vrot.slane %v1175_v4, 4  ;;  %v331_v12 = vrot.slane %v1178_v5, 4 }
 0x11a   : > { %v396_v25 = vsel %vm233_vm0, %v364_v41, %v395_v8  ;;  %v1196_v7 = vsel %vm233_vm0, %v405_v63, %v356_v39  ;;  %v1200_v32 = vperm.slane %v1104_v2, %v1155_v19  ;;  %v259_v40 = vrot.slane %v1099_v0, 4 }
 0x11b   : > { %v1209_v13 = vperm.slane %v396_v25, %v1155_v19  ;;  %v607_v39 = vrot.slane %v1106_v3, 4  ;;  %v443_v2 = vrot.slane %v1188_v24, 4  ;;  %v1215_v43 = vperm.slane %v1084_v47, %v1155_v19 }
 0x11c   : > { %v1219_v44 = vperm.slane %v1076_v42, %v1155_v19  ;;  %v671_v57 = vrot.slane %v1200_v32, 4  ;;  %v1241_v58 = vperm.slane %v1116_v16, %v1155_v19 }
 0x11e   : > { %v1133_v29 = vpop.permute.xlu1 %190  ;;  %v1135_v14 = vpop.permute.xlu0 %198 }
 0x11f   : > { %v1141_v31 = vpop.permute.xlu2 %212  ;;  %v383_v22 = vrot.slane %v1135_v14, 4  ;;  %v595_v60 = vrot.slane %v1133_v29, 4 }
 0x120   : > { %v1148_v38 = vsel %vm233_vm0, %v1141_v31, %v483_v28  ;;  %v481_v45 = vrot.slane %v1141_v31, 4 }
 0x121   : > { %v1232_v42 = vperm.slane %v1148_v38, %v1063_v26  ;;  %v1250_v38 = vperm.slane %v1119_v17, %v1155_v19 }
 0x123   : > { %v543_v25 = vrot.slane %v1232_v42, 4 }
 0x126   : > { %v1159_v55 = vpop.permute.xlu1 %200  ;;  %v209_v56 = vpop.permute.xlu0 %208 }
 0x127   : > { %v223_v18 = vpop.permute.xlu2 %222  ;;  %v257_v36 = vrot.slane %v209_v56, 4  ;;  %v260_v48 = vsel %vm233_vm0, %v209_v56, %v259_v40  ;;  %v1237_v56 = vperm.slane %v1111_v9, %v1155_v19  ;;  %v482_v9 = vsel %vm233_vm0, %v481_v45, %v1101_v1 }
 0x128   : > { %v381_v33 = vrot.slane %v223_v18, 4  ;;  %v384_v35 = vsel %vm233_vm0, %v223_v18, %v383_v22 }
 0x129   : > { %v392_v49 = vperm.slane %v384_v35, %v1063_v26  ;;  %v258_v54 = vsel %vm233_vm0, %v257_v36, %v1099_v0  ;;  %v268_v0 = vperm.slane %v260_v48, %v1063_v26 }
 0x12a   : > { %v382_v53 = vsel %vm233_vm0, %v381_v33, %v1135_v14  ;;  %v495_v14 = vrot.slane %v1159_v55, 4  ;;  %v264_v16 = vperm.slane %v258_v54, %v1063_v26 }
 0x12b   : > { %v1256_v63 = vperm.slane %v382_v53, %v1063_v26  ;;  %v319_v35 = vrot.slane %v268_v0, 4 }
 0x12e   : > { %v211_v27 = vpop.permute.xlu1 %210  ;;  %v1191_v28 = vpop.permute.xlu0 %214 }
 0x12f   : > { %v372_v37 = vsel %vm233_vm0, %v211_v27, %v371_v10  ;;  %v369_v47 = vrot.slane %v211_v27, 4  ;;  %v593_v45 = vrot.slane %v1191_v28, 4 }
 0x130   : > { %v1206_v41 = vperm.slane %v372_v37, %v1063_v26  ;;  %v307_v37 = vrot.slane %v264_v16, 4 }
 0x131   : > { %v370_v10 = vsel %vm233_vm0, %v369_v47, %v1069_v34  ;;  %v596_v34 = vsel %vm233_vm0, %v1191_v28, %v595_v60  ;;  %v429_v60 = vrot.slane %v392_v49, 4 }
 0x132   : > { %v431_v51 = vrot.slane %v1206_v41, 4  ;;  %v1279_v40 = vperm.slane %v370_v10, %v1063_v26  ;;  %v1291_v54 = vperm.slane %v596_v34, %v1063_v26 }
 0x133   : > { %v430_v34 = vsel %vm233_vm0, %v429_v60, %v1206_v41 }
 0x134   : > { %v432_v31 = vsel %vm233_vm0, %v392_v49, %v431_v51  ;;  %v1334_v60 = vperm.slane %v430_v34, %v1155_v19 }
 0x135   : > { %v1246_v59 = vperm.slane %v432_v31, %v1155_v19 }
 0x136   : > { %v221_v6 = vpop.permute.xlu1 %220  ;;  %v1259_v8 = vpop.permute.xlu0 %224 }
 0x137   : > { %v269_v18 = vrot.slane %v221_v6, 4  ;;  %v272_v17 = vsel %vm233_vm0, %v221_v6, %v271_v15  ;;  %v496_v22 = vsel %vm233_vm0, %v1259_v8, %v495_v14  ;;  %v456_v33 = vsel %vm233_vm0, %v1246_v59, %v455_v30 }
 0x138   : > { %v280_v1 = vperm.slane %v272_v17, %v1063_v26  ;;  %v1269_v27 = vperm.slane %v496_v22, %v1063_v26  ;;  %v727_v36 = vsel %vm681_vm1, %v456_v33, -inf  ;;  %v417_v30 = vrot.slane %v1256_v63, 4 }
 0x139   : > { %v270_v15 = vsel %vm233_vm0, %v269_v18, %v1090_v52  ;;  %728 = vmax.xlane.f32.xlu1 %v727_v36  ;;  %v563_v52 = vrot.slane %v1219_v44, 4  ;;  %v1296_v14 = vperm.slane %v482_v9, %v1063_v26  ;;  %v594_v18 = vsel %vm233_vm0, %v593_v45, %v1133_v29 }
 0x13a   : > { %v276_v48 = vperm.slane %v270_v15, %v1063_v26  ;;  %v1286_v51 = vsel %vm233_vm0, %v1269_v27, %v543_v25  ;;  %v320_v53 = vsel %vm233_vm0, %v280_v1, %v319_v35  ;;  %v317_v6 = vrot.slane %v280_v1, 4 }
 0x13b   : > { %v328_v31 = vperm.slane %v320_v53, %v1155_v19  ;;  %v418_v33 = vsel %vm233_vm0, %v417_v30, %v1279_v40  ;;  %v655_v29 = vrot.slane %v1291_v54, 4  ;;  %v493_v41 = vrot.slane %v1259_v8, 4 }
 0x13c   : > { %v305_v47 = vrot.slane %v276_v48, 4  ;;  %v308_v28 = vsel %vm233_vm0, %v276_v48, %v307_v37  ;;  %v318_v36 = vsel %vm233_vm0, %v317_v6, %v268_v0  ;;  %v424_v37 = vperm.slane %v418_v33, %v1155_v19 }
 0x13d   : > { %v316_v10 = vperm.slane %v308_v28, %v1155_v19  ;;  %v344_v22 = vsel %vm233_vm0, %v328_v31, %v343_v20  ;;  %v600_v53 = vperm.slane %v594_v18, %v1063_v26  ;;  %v341_v0 = vrot.slane %v328_v31, 4 }
 0x13e   : > { %v227_v17 = vpop.permute.xlu1 %226  ;;  %v306_v25 = vsel %vm233_vm0, %v305_v47, %v264_v16  ;;  %v703_v49 = vsel %vm681_vm1, %v344_v22, -inf  ;;  %v324_v8 = vperm.slane %v318_v36, %v1155_v19  ;;  %v567_v6 = vrot.slane %v1215_v43, 4 }
 0x13f   : > { %v605_v35 = vrot.slane %v227_v17, 4  ;;  %v608_v9 = vsel %vm233_vm0, %v227_v17, %v607_v39  ;;  %v333_v1 = vrot.slane %v316_v10, 4  ;;  %704 = vmax.xlane.f32.xlu2 %v703_v49  ;;  %v312_v20 = vperm.slane %v306_v25, %v1155_v19 }
 0x140   : > { %v1313_v15 = vperm.slane %v608_v9, %v1063_v26  ;;  %v419_v17 = vrot.slane %v1279_v40, 4  ;;  %v441_v22 = vrot.slane %v424_v37, 4  ;;  %v494_v31 = vsel %vm233_vm0, %v493_v41, %v1159_v55 }
 0x141   : > { %v606_v16 = vsel %vm233_vm0, %v605_v35, %v1106_v3  ;;  %v334_v39 = vsel %vm233_vm0, %v333_v1, %v1172_v62  ;;  %v332_v3 = vsel %vm233_vm0, %v312_v20, %v331_v12  ;;  %v329_v47 = vrot.slane %v312_v20, 4 }
 0x142   : > { %v612_v45 = vperm.slane %v606_v16, %v1063_v26  ;;  %v656_v48 = vsel %vm233_vm0, %v1313_v15, %v655_v29  ;;  %v688_v30 = vsel %vm681_vm1, %v334_v39, -inf  ;;  %v685_v28 = vsel %vm681_vm1, %v332_v3, -inf }
 0x143   : > { %689 = vmax.xlane.f32.xlu1 %v688_v30  ;;  %686 = vmax.xlane.f32.xlu0 %v685_v28  ;;  %v330_v18 = vsel %vm233_vm0, %v329_v47, %v1178_v5  ;;  %v667_v12 = vrot.slane %v1237_v56, 4  ;;  %v675_v33 = vrot.slane %v1250_v38, 4  ;;  %v679_v35 = vrot.slane %v1241_v58, 4 }
 0x144   : > { %v641_v25 = vrot.slane %v612_v45, 4  ;;  %v531_v9 = vrot.slane %v1296_v14, 4  ;;  %v643_v49 = vrot.slane %v600_v53, 4  ;;  %v682_v40 = vsel %vm681_vm1, %v330_v18, -inf }
 0x145   : > { %v342_v1 = vsel %vm233_vm0, %v341_v0, %v1166_v11  ;;  %v541_v5 = vrot.slane %v1269_v27, 4  ;;  %v340_v55 = vsel %vm233_vm0, %v324_v8, %v339_v21  ;;  %v444_v34 = vsel %vm233_vm0, %v424_v37, %v443_v2 }
 0x146   : > { %v449_v29 = vrot.slane %v1334_v60, 4  ;;  %v1358_v20 = vperm.slane %v494_v31, %v1063_v26  ;;  %v442_v16 = vsel %vm233_vm0, %v441_v22, %v1188_v24  ;;  %v420_v11 = vsel %vm233_vm0, %v1256_v63, %v419_v17 }
 0x147   : > { %683 = vmax.xlane.f32.xlu2 %v682_v40  ;;  %v644_v27 = vsel %vm233_vm0, %v612_v45, %v643_v49  ;;  %v700_v39 = vsel %vm681_vm1, %v342_v1, -inf  ;;  %v336_v21 = vsel %vm233_vm0, %v316_v10, %v335_v23  ;;  %v642_v36 = vsel %vm233_vm0, %v641_v25, %v600_v53 }
 0x148   : > { %v652_v2 = vperm.slane %v644_v27, %v1155_v19  ;;  %v653_v26 = vrot.slane %v1313_v15, 4  ;;  %v697_v24 = vsel %vm681_vm1, %v340_v55, -inf  ;;  %v709_v37 = vsel %vm681_vm1, %v444_v34, -inf }
 0x149   : > { %v648_v63 = vperm.slane %v642_v36, %v1155_v19  ;;  %v337_v41 = vrot.slane %v324_v8, 4  ;;  %v552_v23 = vperm.slane %v1286_v51, %v1155_v19  ;;  %v542_v10 = vsel %vm233_vm0, %v541_v5, %v1232_v42 }
 0x14a   : > { %v1378_v62 = vsel %vm233_vm0, %v652_v2, %v671_v57  ;;  %v691_v15 = vsel %vm681_vm1, %v336_v21, -inf  ;;  %v706_v45 = vsel %vm681_vm1, %v442_v16, -inf  ;;  %v428_v3 = vperm.slane %v420_v11, %v1155_v19 }
 0x14b   : > { %701 = vmax.xlane.f32.xlu1 %v700_v39  ;;  %698 = vmax.xlane.f32.xlu0 %v697_v24  ;;  %v1387_v30 = vsel %vm233_vm0, %v648_v63, %v667_v12  ;;  %v665_v53 = vrot.slane %v648_v63, 4  ;;  %v532_v57 = vsel %vm233_vm0, %v1358_v20, %v531_v9  ;;  %v565_v47 = vrot.slane %v552_v23, 4 }
 0x14c   : > { %v548_v51 = vperm.slane %v542_v10, %v1155_v19  ;;  %v669_v0 = vrot.slane %v652_v2, 4  ;;  %v664_v28 = vperm.slane %v656_v48, %v1155_v19  ;;  %v654_v8 = vsel %vm233_vm0, %v653_v26, %v1291_v54 }
 0x14d   : > { %v1395_v42 = vsel %vm233_vm0, %v665_v53, %v1237_v56  ;;  %v338_v17 = vsel %vm233_vm0, %v337_v41, %v1169_v61  ;;  %v566_v18 = vsel %vm233_vm0, %v565_v47, %v1215_v43  ;;  %v660_v12 = vperm.slane %v654_v8, %v1155_v19 }
 0x14e   : > { %v561_v22 = vrot.slane %v548_v51, 4  ;;  %v1406_v31 = vsel %vm681_vm1, %v566_v18, -inf  ;;  %v670_v56 = vsel %vm233_vm0, %v669_v0, %v1200_v32  ;;  %v677_v48 = vrot.slane %v664_v28, 4 }
 0x14f   : > { %692 = vmax.xlane.f32.xlu2 %v691_v15  ;;  %v564_v54 = vsel %vm233_vm0, %v548_v51, %v563_v52  ;;  %v1416_v25 = vsel %vm681_vm1, %v670_v56, -inf  ;;  %v673_v9 = vrot.slane %v660_v12, 4  ;;  %v568_v52 = vsel %vm233_vm0, %v552_v23, %v567_v6 }
 0x150   : > { %v562_v61 = vsel %vm233_vm0, %v561_v22, %v1219_v44  ;;  %v1419_v49 = vsel %vm681_vm1, %v564_v54, -inf  ;;  %v678_v32 = vsel %vm233_vm0, %v677_v48, %v1241_v58  ;;  %v676_v1 = vsel %vm233_vm0, %v660_v12, %v675_v33 }
 0x151   : > { %v742_v40 = vsel %vm681_vm1, %v562_v61, -inf  ;;  %v772_v44 = vsel %vm681_vm1, %v678_v32, -inf  ;;  %v674_v5 = vsel %vm233_vm0, %v673_v9, %v1250_v38  ;;  %v751_v55 = vsel %vm681_vm1, %v568_v52, -inf }
 0x152   : > { %v769_v34 = vsel %vm681_vm1, %v676_v1, -inf  ;;  %v412_v16 = vperm.slane %v1196_v7, %v1155_v19  ;;  %v766_v11 = vsel %vm681_vm1, %v674_v5, -inf  ;;  %v680_v43 = vsel %vm233_vm0, %v664_v28, %v679_v35 }
 0x153   : > { %710 = vmax.xlane.f32.xlu1 %v709_v37  ;;  %707 = vmax.xlane.f32.xlu0 %v706_v45  ;;  %v775_v6 = vsel %vm681_vm1, %v680_v43, -inf  ;;  %v694_v33 = vsel %vm681_vm1, %v338_v17, -inf  ;;  %v447_v27 = vrot.slane %v1209_v13, 4  ;;  %v540_v39 = vperm.slane %v532_v57, %v1155_v19 }
 0x154   : > { %v450_v38 = vsel %vm233_vm0, %v449_v29, %v412_v16  ;;  %v445_v21 = vrot.slane %v428_v3, 4  ;;  %v529_v26 = vrot.slane %v1358_v20, 4  ;;  %v453_v29 = vrot.slane %v1246_v59, 4 }
 0x155   : > { %v448_v7 = vsel %vm233_vm0, %v428_v3, %v447_v27  ;;  %v718_v2 = vsel %vm681_vm1, %v450_v38, -inf  ;;  %v557_v58 = vrot.slane %v540_v39, 4  ;;  %v516_v24 = vperm.slane %v1087_v50, %v1155_v19 }
 0x156   : > { %v715_v35 = vsel %vm681_vm1, %v448_v7, -inf  ;;  %v446_v36 = vsel %vm233_vm0, %v445_v21, %v1209_v13  ;;  %v454_v41 = vsel %vm233_vm0, %v453_v29, %v1175_v4  ;;  %v530_v23 = vsel %vm233_vm0, %v529_v26, %v1296_v14 }
 0x157   : > { %695 = vmax.xlane.f32.xlu2 %v694_v33  ;;  %v712_v37 = vsel %vm681_vm1, %v446_v36, -inf  ;;  %v558_v63 = vsel %vm233_vm0, %v557_v58, %v516_v24  ;;  %v451_v20 = vrot.slane %v412_v16, 4  ;;  %v512_v59 = vperm.slane %v1081_v46, %v1155_v19 }
 0x158   : > { %v736_v13 = vsel %vm681_vm1, %v558_v63, -inf  ;;  %v724_v50 = vsel %vm681_vm1, %v454_v41, -inf  ;;  %v536_v15 = vperm.slane %v530_v23, %v1155_v19  ;;  %v559_v45 = vrot.slane %v516_v24, 4 }
 0x159   : > { %v452_v10 = vsel %vm233_vm0, %v1334_v60, %v451_v20  ;;  %v555_v53 = vrot.slane %v512_v59, 4  ;;  %v763_v51 = vsel %vm681_vm1, %v1378_v62, -inf  ;;  %v757_v0 = vsel %vm681_vm1, %v1387_v30, -inf }
 0x15a   : > { %v721_v4 = vsel %vm681_vm1, %v452_v10, -inf  ;;  %v560_v14 = vsel %vm233_vm0, %v540_v39, %v559_v45  ;;  %v553_v3 = vrot.slane %v536_v15, 4  ;;  %v754_v28 = vsel %vm681_vm1, %v1395_v42, -inf }
 0x15b   : > { %719 = vmax.xlane.f32.xlu1 %v718_v2  ;;  %716 = vmax.xlane.f32.xlu0 %v715_v35  ;;  %v556_v57 = vsel %vm233_vm0, %v536_v15, %v555_v53  ;;  %v739_v46 = vsel %vm681_vm1, %v560_v14, -inf  ;;  %v810_v22 = vlaneseq }
 0x15c   : > { %v733_v47 = vsel %vm681_vm1, %v556_v57, -inf  ;;  %v554_v60 = vsel %vm233_vm0, %v553_v3, %v512_v59 }
 0x15d   : > { %v730_v19 = vsel %vm681_vm1, %v554_v60, -inf  ;;  %v1482_v56 = vand.u32 127, %v810_v22 }
 0x15f   : > { %713 = vmax.xlane.f32.xlu2 %v712_v37 }
 0x163   : > { %737 = vmax.xlane.f32.xlu1 %v736_v13  ;;  %725 = vmax.xlane.f32.xlu0 %v724_v50 }
 0x167   : > { %722 = vmax.xlane.f32.xlu2 %v721_v4 }
 0x16b   : > { %740 = vmax.xlane.f32.xlu1 %v739_v46  ;;  %734 = vmax.xlane.f32.xlu0 %v733_v47 }
 0x16f   : > { %731 = vmax.xlane.f32.xlu2 %v730_v19 }
 0x173   : > { %764 = vmax.xlane.f32.xlu1 %v763_v51  ;;  %758 = vmax.xlane.f32.xlu0 %v757_v0 }
 0x177   : > { %755 = vmax.xlane.f32.xlu2 %v754_v28 }
 0x17b   : > { %749 = vmax.xlane.f32.xlu1 %v1406_v31  ;;  %743 = vmax.xlane.f32.xlu0 %v742_v40 }
 0x17f   : > { %761 = vmax.xlane.f32.xlu2 %v1416_v25 }
 0x183   : > { %773 = vmax.xlane.f32.xlu1 %v772_v44  ;;  %767 = vmax.xlane.f32.xlu0 %v766_v11 }
 0x187   : > { %746 = vmax.xlane.f32.xlu2 %v1419_v49 }
 0x18b   : > { %752 = vmax.xlane.f32.xlu0 %v751_v55 }
 0x18f   : > { %770 = vmax.xlane.f32.xlu2 %v769_v34 }
 0x197   : > { %776 = vmax.xlane.f32.xlu2 %v775_v6 }
 0x1ac   : > { %v729_v62 = vpop.xlane.xlu1 %728 }
 0x1ad   : > { %v827_v23 = vperm.slane %v729_v62, %v1482_v56 }
 0x1b2   : > { %v705_v8 = vpop.xlane.xlu2 %704 }
 0x1b3   : > { %v819_v16 = vperm.slane %v705_v8, %v1482_v56 }
 0x1b6   : > { %v690_v30 = vpop.xlane.xlu1 %689  ;;  %v687_v17 = vpop.xlane.xlu0 %686 }
 0x1b7   : > { %v813_v54 = vperm.slane %v687_v17, %v1482_v56  ;;  %v814_v49 = vperm.slane %v690_v30, %v1482_v56 }
 0x1ba   : > { %v684_v18 = vpop.xlane.xlu2 %683 }
 0x1bb   : > { %v812_v48 = vperm.slane %v684_v18, %v1482_v56 }
 0x1bd   : > { %v845_v25 = vsel %vm844_vm2, %v813_v54, %v812_v48 }
 0x1be   : > { %v699_v42 = vpop.xlane.xlu0 %698  ;;  %v702_v12 = vpop.xlane.xlu1 %701  ;;  %v847_v52 = vsel %vm846_vm3, %v814_v49, %v845_v25 }
 0x1bf   : > { %v817_v44 = vperm.slane %v699_v42, %v1482_v56  ;;  %v818_v55 = vperm.slane %v702_v12, %v1482_v56 }
 0x1c2   : > { %v693_v31 = vpop.xlane.xlu2 %692 }
 0x1c3   : > { %v815_v9 = vperm.slane %v693_v31, %v1482_v56 }
 0x1c5   : > { %v849_v5 = vsel %vm848_vm4, %v815_v9, %v847_v52 }
 0x1c6   : > { %v708_v61 = vpop.xlane.xlu0 %707  ;;  %v711_v40 = vpop.xlane.xlu1 %710 }
 0x1c7   : > { %v821_v38 = vperm.slane %v711_v40, %v1482_v56  ;;  %v820_v27 = vperm.slane %v708_v61, %v1482_v56 }
 0x1c9   : > { %v858_v2 = vsel %vm844_vm2, %v821_v38, %v820_v27 }
 0x1ca   : > { %v696_v32 = vpop.xlane.xlu2 %695 }
 0x1cb   : > { %v816_v1 = vperm.slane %v696_v32, %v1482_v56 }
 0x1cd   : > { %v851_v34 = vsel %vm850_vm5, %v816_v1, %v849_v5 }
 0x1ce   : > { %v853_v11 = vsel %vm852_vm6, %v817_v44, %v851_v34  ;;  %v717_v6 = vpop.xlane.xlu0 %716  ;;  %v720_v7 = vpop.xlane.xlu1 %719 }
 0x1cf   : > { %v855_v43 = vsel %vm854_vm7, %v818_v55, %v853_v11  ;;  %v823_v35 = vperm.slane %v717_v6, %v1482_v56  ;;  %v824_v29 = vperm.slane %v720_v7, %v1482_v56 }
 0x1d0   : > { %v857_v33 = vsel %vm856_vm8, %v819_v16, %v855_v43 }
 0x1d1   : > { %884 = vst.msk [vmem:[%s1500_s23] sm:$0xff] %vm883_vm9, %v857_v33 }
 0x1d2   : > { %v714_v39 = vpop.xlane.xlu2 %713 }
 0x1d3   : > { %v822_v21 = vperm.slane %v714_v39, %v1482_v56 }
 0x1d5   : > { %v859_v58 = vsel %vm846_vm3, %v822_v21, %v858_v2 }
 0x1d6   : > { %v726_v36 = vpop.xlane.xlu0 %725  ;;  %v860_v26 = vsel %vm848_vm4, %v823_v35, %v859_v58  ;;  %v738_v20 = vpop.xlane.xlu1 %737 }
 0x1d7   : > { %v826_v63 = vperm.slane %v726_v36, %v1482_v56  ;;  %v861_v41 = vsel %vm850_vm5, %v824_v29, %v860_v26  ;;  %v830_v19 = vperm.slane %v738_v20, %v1482_v56 }
 0x1da   : > { %v723_v24 = vpop.xlane.xlu2 %722 }
 0x1db   : > { %v825_v37 = vperm.slane %v723_v24, %v1482_v56 }
 0x1dd   : > { %v862_v13 = vsel %vm852_vm6, %v825_v37, %v861_v41 }
 0x1de   : > { %v863_v59 = vsel %vm854_vm7, %v826_v63, %v862_v13  ;;  %v735_v50 = vpop.xlane.xlu0 %734  ;;  %v741_v4 = vpop.xlane.xlu1 %740 }
 0x1df   : > { %v864_v10 = vsel %vm856_vm8, %v827_v23, %v863_v59  ;;  %v829_v47 = vperm.slane %v735_v50, %v1482_v56  ;;  %v831_v62 = vperm.slane %v741_v4, %v1482_v56 }
 0x1e0   : > { %885 = vst.msk [vmem:[%s1500_s23 + $0x8] sm:$0xff] %vm883_vm9, %v864_v10 }
 0x1e2   : > { %v732_v15 = vpop.xlane.xlu2 %731 }
 0x1e3   : > { %v828_v3 = vperm.slane %v732_v15, %v1482_v56 }
 0x1e5   : > { %v865_v60 = vsel %vm844_vm2, %v829_v47, %v828_v3 }
 0x1e6   : > { %v759_v45 = vpop.xlane.xlu0 %758  ;;  %v765_v57 = vpop.xlane.xlu1 %764  ;;  %v866_v0 = vsel %vm846_vm3, %v830_v19, %v865_v60 }
 0x1e7   : > { %v867_v18 = vsel %vm848_vm4, %v831_v62, %v866_v0  ;;  %v837_v25 = vperm.slane %v759_v45, %v1482_v56  ;;  %v839_v44 = vperm.slane %v765_v57, %v1482_v56 }
 0x1ea   : > { %v756_v14 = vpop.xlane.xlu2 %755 }
 0x1eb   : > { %v836_v12 = vperm.slane %v756_v14, %v1482_v56 }
 0x1ed   : > { %v872_v32 = vsel %vm844_vm2, %v837_v25, %v836_v12 }
 0x1ee   : > { %v744_v53 = vpop.xlane.xlu0 %743  ;;  %v750_v17 = vpop.xlane.xlu1 %749 }
 0x1ef   : > { %v832_v28 = vperm.slane %v744_v53, %v1482_v56  ;;  %v834_v31 = vperm.slane %v750_v17, %v1482_v56 }
 0x1f1   : > { %v868_v22 = vsel %vm850_vm5, %v832_v28, %v867_v18 }
 0x1f2   : > { %v762_v46 = vpop.xlane.xlu2 %761 }
 0x1f3   : > { %v838_v54 = vperm.slane %v762_v46, %v1482_v56 }
 0x1f5   : > { %v873_v52 = vsel %vm846_vm3, %v838_v54, %v872_v32 }
 0x1f6   : > { %v768_v51 = vpop.xlane.xlu0 %767  ;;  %v774_v55 = vpop.xlane.xlu1 %773  ;;  %v874_v34 = vsel %vm848_vm4, %v839_v44, %v873_v52 }
 0x1f7   : > { %v840_v1 = vperm.slane %v768_v51, %v1482_v56  ;;  %v842_v43 = vperm.slane %v774_v55, %v1482_v56 }
 0x1f9   : > { %v875_v16 = vsel %vm850_vm5, %v840_v1, %v874_v34 }
 0x1fa   : > { %v747_v8 = vpop.xlane.xlu2 %746 }
 0x1fb   : > { %v833_v30 = vperm.slane %v747_v8, %v1482_v56 }
 0x1fd   : > { %v869_v42 = vsel %vm852_vm6, %v833_v30, %v868_v22 }
 0x1fe   : > { %v753_v48 = vpop.xlane.xlu0 %752  ;;  %v870_v9 = vsel %vm854_vm7, %v834_v31, %v869_v42 }
 0x1ff   : > { %v835_v61 = vperm.slane %v753_v48, %v1482_v56 }
 0x201   : > { %v871_v49 = vsel %vm856_vm8, %v835_v61, %v870_v9 }
 0x202   : > { %v771_v40 = vpop.xlane.xlu2 %770  ;;  %886 = vst.msk [vmem:[%s1500_s23 + $0x10] sm:$0xff] %vm883_vm9, %v871_v49 }
 0x203   : > { %v841_v5 = vperm.slane %v771_v40, %v1482_v56 }
 0x205   : > { %v876_v11 = vsel %vm852_vm6, %v841_v5, %v875_v16 }
 0x206   : > { %v877_v38 = vsel %vm854_vm7, %v842_v43, %v876_v11 }
 0x20a   : > { %v777_v6 = vpop.xlane.xlu2 %776 }
 0x20b   : > { %v843_v33 = vperm.slane %v777_v6, %v1482_v56 }
 0x20d   : > { %v878_v27 = vsel %vm856_vm8, %v843_v33, %v877_v38 }
 0x20e   : > { %887 = vst.msk [vmem:[%s1500_s23 + $0x18] sm:$0xff] %vm883_vm9, %v878_v27 }
 0x20f PF: > { %s11_s6 = sadd.s32 1, %s979_s6  }
 0x210   : > { %p8_p4 = scmp.ge.s32.totalorder %s11_s6, 4  }
 0x212   :  { %10 = sbr.rel (!%p8_p4) target bundleno = 1 (0x1), region = 54 }

</bundles_post_ra>
